<compile_context>
chip_gen: v6e
topology: v6e:2x2x1
jax: 0.10.0
libtpu: 0.0.40
codegen_flags: <defaults>
</compile_context>

<pallas_src>
import jax
import jax.numpy as jnp
from jax.experimental import pallas as pl
from jax.experimental.pallas import tpu as pltpu

IGNORE_INDEX = 255
LANES = 128
# TODO(synk): get_weights() in the reference computes class frequencies with np.unique/median but
# then unconditionally overwrites them with [1.0, 100.0]; we replicate only the constant weights.
CLASS_WEIGHT_0 = 1.0
CLASS_WEIGHT_1 = 100.0


def _round_up(x, m):
    return ((x + m - 1) // m) * m


def _weighted_ce_kernel(logits_ref, target_ref, num_ref, den_ref, num_sc, den_sc):
    # logits_ref: (2, tr, 128) f32   target_ref: (1, tr, 128) i32
    # num_ref/den_ref: (1, 1, 8, 128) f32 per-(sample, chunk) partial outputs
    # num_sc/den_sc:  (8, 128) f32 vreg-shaped accumulators
    j = pl.program_id(2)

    @pl.when(j == 0)
    def _init():
        num_sc[...] = jnp.zeros_like(num_sc)
        den_sc[...] = jnp.zeros_like(den_sc)

    x0 = logits_ref[0].astype(jnp.float32)           # (tr, 128)
    x1 = logits_ref[1].astype(jnp.float32)           # (tr, 128)
    t = target_ref[0]                                # (tr, 128) int32

    valid = t != IGNORE_INDEX
    is1 = t == 1

    # nll = logsumexp(x0, x1) - x[t] = log(1 + exp(x_other - x_t)), numerically stable form.
    d = jnp.where(is1, x0 - x1, x1 - x0)             # x_other - x_t
    nll = jnp.maximum(d, 0.0) + jnp.log(1.0 + jnp.exp(-jnp.abs(d)))
    w_t = jnp.where(is1, jnp.float32(CLASS_WEIGHT_1), jnp.float32(CLASS_WEIGHT_0))

    loss_px = jnp.where(valid, w_t * nll, 0.0)       # (tr, 128)
    wsum_px = jnp.where(valid, w_t, 0.0)             # (tr, 128)

    tr = loss_px.shape[0]
    # Fold the sublane-major axis with pure VPU adds (no per-tile XLU lane reduction).
    num_sc[...] += jnp.sum(loss_px.reshape(tr // 8, 8, LANES), axis=0)
    den_sc[...] += jnp.sum(wsum_px.reshape(tr // 8, 8, LANES), axis=0)

    @pl.when(j == pl.num_programs(2) - 1)
    def _finalize():
        num_ref[...] = num_sc[...].reshape(1, 1, 8, LANES)
        den_ref[...] = den_sc[...].reshape(1, 1, 8, LANES)


def cross_entropy_loss_2d_weight(output, target, *, max_rows_per_tile=1024, n_outer=2):
    """output: (N, 2, H, W) float logits (NCHW). target: (N, H, W) int labels (255 = ignore)."""
    N, C, H, W = output.shape
    if C != 2:
        raise ValueError("CrossEntropyLoss2dWeight hard-codes 2 classes (weights [1.0, 100.0]).")
    P = H * W

    rows = pl.cdiv(P, LANES)                       # 128-lane rows of pixels per sample
    rows_per_chunk = pl.cdiv(rows, n_outer)        # rows handled by each parallel chunk
    k = pl.cdiv(rows_per_chunk, max_rows_per_tile) # tiles per chunk
    tr = _round_up(pl.cdiv(rows_per_chunk, k), 8)  # rows per tile (multiple of 8 sublanes)
    t_inner = pl.cdiv(rows_per_chunk, tr)          # grid steps along the reduction axis
    rows_pad = n_outer * t_inner * tr
    p_pad = rows_pad * LANES

    # Pure reshapes (no transpose); pad only if the pixel count doesn't tile exactly.
    logits = output.reshape(N, C, P)
    if logits.dtype != jnp.float32:
        logits = logits.astype(jnp.float32)
    tgt = target.reshape(N, P).astype(jnp.int32)
    if p_pad != P:
        # Padded targets are IGNORE_INDEX -> padded (zero) logits contribute nothing.
        logits = jnp.pad(logits, ((0, 0), (0, 0), (0, p_pad - P)))
        tgt = jnp.pad(tgt, ((0, 0), (0, p_pad - P)), constant_values=IGNORE_INDEX)
    logits = logits.reshape(N * C, rows_pad, LANES)
    tgt = tgt.reshape(N, rows_pad, LANES)

    num_out, den_out = pl.pallas_call(
        _weighted_ce_kernel,
        out_shape=(
            jax.ShapeDtypeStruct((N, n_outer, 8, LANES), jnp.float32),
            jax.ShapeDtypeStruct((N, n_outer, 8, LANES), jnp.float32),
        ),
        grid_spec=pltpu.PrefetchScalarGridSpec(
            num_scalar_prefetch=0,
            grid=(N, n_outer, t_inner),
            in_specs=[
                # logits view (N*C, rows_pad, 128): block index n along dim0 selects rows n*C..n*C+1
                pl.BlockSpec((C, tr, LANES), lambda n, o, j: (n, o * t_inner + j, 0)),
                pl.BlockSpec((1, tr, LANES), lambda n, o, j: (n, o * t_inner + j, 0)),
            ],
            out_specs=[
                pl.BlockSpec((1, 1, 8, LANES), lambda n, o, j: (n, o, 0, 0)),
                pl.BlockSpec((1, 1, 8, LANES), lambda n, o, j: (n, o, 0, 0)),
            ],
            scratch_shapes=[
                pltpu.VMEM((8, LANES), jnp.float32),  # weighted-loss accumulator
                pltpu.VMEM((8, LANES), jnp.float32),  # weight-sum accumulator
            ],
        ),
        compiler_params=pltpu.CompilerParams(
            dimension_semantics=("parallel", "parallel", "arbitrary")),
    )(logits, tgt)

    # Tiny final reduction over the (N, n_outer, 8, 128) partials.
    return jnp.sum(num_out) / jnp.sum(den_out)


def _ref_loss(output, target):
    """Pure-JAX reference matching torch.nn.CrossEntropyLoss(weight=[1,100], ignore_index=255, 'mean')."""
    weights = jnp.array([CLASS_WEIGHT_0, CLASS_WEIGHT_1], dtype=jnp.float32)
    N, C, H, W = output.shape
    logits = jnp.transpose(output, (0, 2, 3, 1)).reshape(-1, C)
    t = target.reshape(-1)
    valid = t != IGNORE_INDEX
    t_safe = jnp.where(valid, t, 0)
    logp = jax.nn.log_softmax(logits.astype(jnp.float32), axis=-1)
    nll = -jnp.take_along_axis(logp, t_safe[:, None], axis=-1)[:, 0]
    w_t = weights[t_safe]
    num = jnp.sum(jnp.where(valid, w_t * nll, 0.0))
    den = jnp.sum(jnp.where(valid, w_t, 0.0))
    return num / den


if __name__ == "__main__":
    key = jax.random.PRNGKey(0)
    k1, k2, k3 = jax.random.split(key, 3)

    N, C, H, W = 2, 2, 16, 16  # 2 classes (module's weight vector has length 2)
    output = jax.random.normal(k1, (N, C, H, W), dtype=jnp.float32)
    target = jax.random.randint(k2, (N, H, W), 0, C).astype(jnp.int32)
    # sprinkle some ignored pixels
    ignore_mask = jax.random.uniform(k3, (N, H, W)) < 0.1
    target = jnp.where(ignore_mask, IGNORE_INDEX, target)

    loss_fn = jax.jit(cross_entropy_loss_2d_weight)
    loss = jax.block_until_ready(loss_fn(output, target))
    ref = jax.block_until_ready(_ref_loss(output, target))
    assert jnp.allclose(loss, ref, rtol=1e-5, atol=1e-5), (loss, ref)
    print("KERNEL_OK")
</pallas_src>

<mosaic_0001>
module attributes {stable_mosaic.version = 11 : i64} {
  func.func @_weighted_ce_kernel(%arg0: i32, %arg1: i32, %arg2: i32, %arg3: memref<2x8x128xf32, #tpu.memory_space<vmem>>, %arg4: memref<1x8x128xi32, #tpu.memory_space<vmem>>, %arg5: memref<1x1x8x128xf32, #tpu.memory_space<vmem>>, %arg6: memref<1x1x8x128xf32, #tpu.memory_space<vmem>>, %arg7: memref<8x128xf32, #tpu.memory_space<vmem>>, %arg8: memref<8x128xf32, #tpu.memory_space<vmem>>) attributes {dimension_semantics = [#tpu.dimension_semantics<parallel>, #tpu.dimension_semantics<parallel>, #tpu.dimension_semantics<arbitrary>], iteration_bounds = array<i64: 2, 2, 1>, scalar_prefetch = 0 : i64, scratch_operands = 2 : i64, tpu.core_type = #tpu.core_type<tc>, window_params = [{transform_indices = @transform_0, window_bounds = array<i64: 2, 8, 128>}, {transform_indices = @transform_1, window_bounds = array<i64: 1, 8, 128>}, {transform_indices = @transform_2, window_bounds = array<i64: 1, 1, 8, 128>}, {transform_indices = @transform_3, window_bounds = array<i64: 1, 1, 8, 128>}]} {
    %c0_i32 = arith.constant 0 : i32
    %0 = arith.cmpi eq, %arg2, %c0_i32 : i32
    %1 = arith.extui %0 : i1 to i32
    %c0_i32_0 = arith.constant 0 : i32
    %2 = arith.cmpi ne, %1, %c0_i32_0 : i32
    scf.if %2 {
      %cst_26 = arith.constant 0.000000e+00 : f32
      %47 = vector.broadcast %cst_26 : f32 to vector<8x128xf32>
      %c0_27 = arith.constant 0 : index
      %c0_28 = arith.constant 0 : index
      %48 = vector.load %arg7[%c0_27, %c0_28] : memref<8x128xf32, #tpu.memory_space<vmem>>, vector<8x128xf32>
      tpu.vector_store %arg7[%c0_27, %c0_28], %47 {strides = array<i32>} : memref<8x128xf32, #tpu.memory_space<vmem>>, vector<8x128xf32>,
      %cst_29 = arith.constant 0.000000e+00 : f32
      %49 = vector.broadcast %cst_29 : f32 to vector<8x128xf32>
      %c0_30 = arith.constant 0 : index
      %c0_31 = arith.constant 0 : index
      %50 = vector.load %arg8[%c0_30, %c0_31] : memref<8x128xf32, #tpu.memory_space<vmem>>, vector<8x128xf32>
      tpu.vector_store %arg8[%c0_30, %c0_31], %49 {strides = array<i32>} : memref<8x128xf32, #tpu.memory_space<vmem>>, vector<8x128xf32>,
    } else {
    }
    %c0 = arith.constant 0 : index
    %c0_1 = arith.constant 0 : index
    %c0_2 = arith.constant 0 : index
    %3 = vector.load %arg3[%c0, %c0_1, %c0_2] : memref<2x8x128xf32, #tpu.memory_space<vmem>>, vector<1x8x128xf32>
    %4 = vector.shape_cast %3 : vector<1x8x128xf32> to vector<8x128xf32>
    %c1 = arith.constant 1 : index
    %c0_3 = arith.constant 0 : index
    %c0_4 = arith.constant 0 : index
    %5 = vector.load %arg3[%c1, %c0_3, %c0_4] : memref<2x8x128xf32, #tpu.memory_space<vmem>>, vector<1x8x128xf32>
    %6 = vector.shape_cast %5 : vector<1x8x128xf32> to vector<8x128xf32>
    %c0_5 = arith.constant 0 : index
    %c0_6 = arith.constant 0 : index
    %c0_7 = arith.constant 0 : index
    %7 = vector.load %arg4[%c0_5, %c0_6, %c0_7] : memref<1x8x128xi32, #tpu.memory_space<vmem>>, vector<1x8x128xi32>
    %8 = vector.shape_cast %7 : vector<1x8x128xi32> to vector<8x128xi32>
    %c255_i32 = arith.constant 255 : i32
    %9 = vector.broadcast %c255_i32 : i32 to vector<8x128xi32>
    %10 = arith.cmpi ne, %8, %9 : vector<8x128xi32>
    %c1_i32 = arith.constant 1 : i32
    %11 = vector.broadcast %c1_i32 : i32 to vector<8x128xi32>
    %12 = arith.cmpi eq, %8, %11 : vector<8x128xi32>
    %13 = arith.subf %4, %6 : vector<8x128xf32>
    %14 = arith.subf %6, %4 : vector<8x128xf32>
    %15 = arith.select %12, %13, %14 : vector<8x128xi1>, vector<8x128xf32>
    %cst = arith.constant 0.000000e+00 : f32
    %16 = vector.broadcast %cst : f32 to vector<8x128xf32>
    %17 = arith.maximumf %15, %16 : vector<8x128xf32>
    %18 = math.absf %15 : vector<8x128xf32>
    %cst_8 = arith.constant 0.000000e+00 : f32
    %19 = vector.broadcast %cst_8 : f32 to vector<8x128xf32>
    %20 = arith.subf %19, %18 : vector<8x128xf32>
    %21 = math.exp %20 : vector<8x128xf32>
    %cst_9 = arith.constant 1.000000e+00 : f32
    %22 = vector.broadcast %cst_9 : f32 to vector<8x128xf32>
    %23 = arith.addf %22, %21 : vector<8x128xf32>
    %24 = math.log %23 : vector<8x128xf32>
    %25 = arith.addf %17, %24 : vector<8x128xf32>
    %cst_10 = arith.constant 1.000000e+02 : f32
    %cst_11 = arith.constant 1.000000e+00 : f32
    %26 = vector.broadcast %cst_10 : f32 to vector<8x128xf32>
    %27 = vector.broadcast %cst_11 : f32 to vector<8x128xf32>
    %28 = arith.select %12, %26, %27 : vector<8x128xi1>, vector<8x128xf32>
    %29 = arith.mulf %28, %25 : vector<8x128xf32>
    %cst_12 = arith.constant 0.000000e+00 : f32
    %30 = vector.broadcast %cst_12 : f32 to vector<8x128xf32>
    %31 = arith.select %10, %29, %30 : vector<8x128xi1>, vector<8x128xf32>
    %cst_13 = arith.constant 0.000000e+00 : f32
    %32 = vector.broadcast %cst_13 : f32 to vector<8x128xf32>
    %33 = arith.select %10, %28, %32 : vector<8x128xi1>, vector<8x128xf32>
    %c0_14 = arith.constant 0 : index
    %c0_15 = arith.constant 0 : index
    %34 = vector.load %arg7[%c0_14, %c0_15] : memref<8x128xf32, #tpu.memory_space<vmem>>, vector<8x128xf32>
    %35 = vector.shape_cast %31 : vector<8x128xf32> to vector<1x8x128xf32>
    %cst_16 = arith.constant dense<0.000000e+00> : vector<8x128xf32>
    %36 = vector.multi_reduction <add>, %35, %cst_16 [0] : vector<1x8x128xf32> to vector<8x128xf32>
    %37 = arith.addf %34, %36 : vector<8x128xf32>
    %c0_17 = arith.constant 0 : index
    %c0_18 = arith.constant 0 : index
    %38 = vector.load %arg7[%c0_17, %c0_18] : memref<8x128xf32, #tpu.memory_space<vmem>>, vector<8x128xf32>
    tpu.vector_store %arg7[%c0_17, %c0_18], %37 {strides = array<i32>} : memref<8x128xf32, #tpu.memory_space<vmem>>, vector<8x128xf32>,
    %c0_19 = arith.constant 0 : index
    %c0_20 = arith.constant 0 : index
    %39 = vector.load %arg8[%c0_19, %c0_20] : memref<8x128xf32, #tpu.memory_space<vmem>>, vector<8x128xf32>
    %40 = vector.shape_cast %33 : vector<8x128xf32> to vector<1x8x128xf32>
    %cst_21 = arith.constant dense<0.000000e+00> : vector<8x128xf32>
    %41 = vector.multi_reduction <add>, %40, %cst_21 [0] : vector<1x8x128xf32> to vector<8x128xf32>
    %42 = arith.addf %39, %41 : vector<8x128xf32>
    %c0_22 = arith.constant 0 : index
    %c0_23 = arith.constant 0 : index
    %43 = vector.load %arg8[%c0_22, %c0_23] : memref<8x128xf32, #tpu.memory_space<vmem>>, vector<8x128xf32>
    tpu.vector_store %arg8[%c0_22, %c0_23], %42 {strides = array<i32>} : memref<8x128xf32, #tpu.memory_space<vmem>>, vector<8x128xf32>,
    %c0_i32_24 = arith.constant 0 : i32
    %44 = arith.cmpi eq, %arg2, %c0_i32_24 : i32
    %45 = arith.extui %44 : i1 to i32
    %c0_i32_25 = arith.constant 0 : i32
    %46 = arith.cmpi ne, %45, %c0_i32_25 : i32
    scf.if %46 {
      %c0_26 = arith.constant 0 : index
      %c0_27 = arith.constant 0 : index
      %47 = vector.load %arg7[%c0_26, %c0_27] : memref<8x128xf32, #tpu.memory_space<vmem>>, vector<8x128xf32>
      %48 = vector.shape_cast %47 : vector<8x128xf32> to vector<1x1x8x128xf32>
      %c0_28 = arith.constant 0 : index
      %c0_29 = arith.constant 0 : index
      %c0_30 = arith.constant 0 : index
      %c0_31 = arith.constant 0 : index
      %49 = vector.load %arg5[%c0_28, %c0_29, %c0_30, %c0_31] : memref<1x1x8x128xf32, #tpu.memory_space<vmem>>, vector<1x1x8x128xf32>
      tpu.vector_store %arg5[%c0_28, %c0_29, %c0_30, %c0_31], %48 {strides = array<i32>} : memref<1x1x8x128xf32, #tpu.memory_space<vmem>>, vector<1x1x8x128xf32>,
      %c0_32 = arith.constant 0 : index
      %c0_33 = arith.constant 0 : index
      %50 = vector.load %arg8[%c0_32, %c0_33] : memref<8x128xf32, #tpu.memory_space<vmem>>, vector<8x128xf32>
      %51 = vector.shape_cast %50 : vector<8x128xf32> to vector<1x1x8x128xf32>
      %c0_34 = arith.constant 0 : index
      %c0_35 = arith.constant 0 : index
      %c0_36 = arith.constant 0 : index
      %c0_37 = arith.constant 0 : index
      %52 = vector.load %arg6[%c0_34, %c0_35, %c0_36, %c0_37] : memref<1x1x8x128xf32, #tpu.memory_space<vmem>>, vector<1x1x8x128xf32>
      tpu.vector_store %arg6[%c0_34, %c0_35, %c0_36, %c0_37], %51 {strides = array<i32>} : memref<1x1x8x128xf32, #tpu.memory_space<vmem>>, vector<1x1x8x128xf32>,
    } else {
    }
    return
  }
  func.func @transform_0(%arg0: i32, %arg1: i32, %arg2: i32) -> (i32, i32, i32) {
    %c1_i32 = arith.constant 1 : i32
    %0 = arith.muli %arg1, %c1_i32 : i32
    %1 = arith.addi %0, %arg2 : i32
    %c0_i32 = arith.constant 0 : i32
    %c0_i32_0 = arith.constant 0 : i32
    return %arg0, %1, %c0_i32 : i32, i32, i32
  }
  func.func @transform_1(%arg0: i32, %arg1: i32, %arg2: i32) -> (i32, i32, i32) {
    %c1_i32 = arith.constant 1 : i32
    %0 = arith.muli %arg1, %c1_i32 : i32
    %1 = arith.addi %0, %arg2 : i32
    %c0_i32 = arith.constant 0 : i32
    %c0_i32_0 = arith.constant 0 : i32
    return %arg0, %1, %c0_i32 : i32, i32, i32
  }
  func.func @transform_2(%arg0: i32, %arg1: i32, %arg2: i32) -> (i32, i32, i32, i32) {
    %c0_i32 = arith.constant 0 : i32
    %c0_i32_0 = arith.constant 0 : i32
    %c0_i32_1 = arith.constant 0 : i32
    return %arg0, %arg1, %c0_i32, %c0_i32_0 : i32, i32, i32, i32
  }
  func.func @transform_3(%arg0: i32, %arg1: i32, %arg2: i32) -> (i32, i32, i32, i32) {
    %c0_i32 = arith.constant 0 : i32
    %c0_i32_0 = arith.constant 0 : i32
    %c0_i32_1 = arith.constant 0 : i32
    return %arg0, %arg1, %c0_i32, %c0_i32_0 : i32, i32, i32, i32
  }
}

</mosaic_0001>

<bundles_post_ra>
// kernel: cross_entropy_loss_2d_weight.1
= control target key start
LH: loop header
LB: loop body
LE: loop exit
PB: predicated region body
PF: predicated region fallthrough
CT: control target
= control target key end

     0   :  { %s664_s12 = smov 0   ;;  %s666_s13 = smov 0   ;;  %s763_s0 = inlined_call_operand.vmem [shape: f32[4,16,128], index: 0, kind: input, shape index: {}]   ;;  %s764_s1 = inlined_call_operand.vmem [shape: s32[2,16,128], index: 1, kind: input, shape index: {}]   ;;  %s765_s2 = inlined_call_operand.vmem [shape: f32[2,2,8,128], index: 2, kind: output, shape index: {0}]   ;;  %s766_s3 = inlined_call_operand.vmem [shape: f32[2,2,8,128], index: 3, kind: output, shape index: {1}]  }
   0x1   :  { %s668_s14 = smov 0   ;;  %s670_s15 = smov 0  }
   0x2   :  { %s672_s16 = smov 0   ;;  %s674_s17 = smov 0  }
   0x3   :  { %s676_s18 = smov 0  }
   0x4 LB: > { %s29_s19 = sadd.s32 1, %s633_s16  ;;  %s33_s20 = sadd.s32 1, %s637_s17  ;;  %s641_s18 = sphi %s676_s18, %s14_s18   ;;  %s637_s17 = sphi %s674_s17, %s772_s17   ;;  %s633_s16 = sphi %s672_s16, %s771_s16   ;;  %s629_s15 = sphi %s670_s15, %s770_s15   ;;  %s625_s14 = sphi %s668_s14, %s769_s14   ;;  %s621_s13 = sphi %s666_s13, %s768_s13   ;;  %s617_s12 = sphi %s664_s12, %s767_s12  }
   0x5   : > { %p31_p0 = scmp.ge.s32.totalorder %s29_s19, 2  ;;  %p51_p1 = scmp.ne.s32.totalorder %s621_s13, %s617_s12 }
   0x6   : > { %p52_p2 = scmp.eq.s32.totalorder %s641_s18, 0  ;;  %s44_s24 = sadd.s32 1, %s621_s13 }
   0x7   : > { %s774_s19 = smov (%p31_p0, %s29_s19), 0  ;;  %s776_s20 = smov (!%p31_p0, %s33_s20), %s637_s17 }
   0x8   : > { %p53_p3 = por %p52_p2, %p51_p1  ;;  %p35_p4 = scmp.ge.s32.totalorder %s776_s20, 2 }
   0x9   : > { %s40_s21 = ssub.s32 %s633_s16, %s774_s19  ;;  %p509_p6 = scmp.ge.s32.totalorder %s641_s18, 4 }
   0xa   : > { %s778_s20 = smov (%p35_p4, %s776_s20), 0 }
   0xb   : > { %s39_s22 = ssub.s32 %s637_s17, %s778_s20  ;;  %163 = sbr.rel (%p509_p6) target bundleno = 23 (0x17), region = 16 }
   0xc   : > { %s41_s23 = sor.u32 %s40_s21, %s39_s22 }
   0xd   : > { %p42_p5 = scmp.eq.s32.totalorder %s41_s23, 0 }
   0xf   : > { %s715_s25 = scalar_select %p42_p5, %s621_s13, %s44_s24  }
  0x10   : > { %166 = sbr.rel (!%p53_p3) target bundleno = 23 (0x17), region = 20  ;;  %s168_s26 = sand.u32 (%p53_p3), 1, %s621_s13  }
  0x11   : > { %s525_s27 = sshll.u32 (%p53_p3), %s637_s17, 2  ;;  %s510_s28 = sshll.u32 (%p53_p3), %s168_s26, 4 }
  0x12   : > { %s174_s29 = sadd.s32 (%p53_p3), %s633_s16, %s525_s27  ;;  %s170_s7 = scalar_lea.vmem (%p53_p3), [#allocation4], %s510_s28 }
  0x13   : > { %s513_s30 = sshll.u32 (%p53_p3), %s174_s29, 3 }
  0x14   : > { %s176_s6 = scalar_lea.vmem (%p53_p3), %s763_s0, %s513_s30 }
  0x15   : > { %v207_v0 = vld [vmem:[%s176_s6] sm:$0xff]  ;;  %v209_v1 = vld [vmem:[%s176_s6 + $0x10] sm:$0xff] }
  0x16   : > { %208 = vst [vmem:[%s170_s7] sm:$0xff] %v207_v0  ;;  %210 = vst [vmem:[%s170_s7 + $0x8] sm:$0xff] %v209_v1 }
  0x17 PF: > { %p514_p7 = scmp.ge.s32.totalorder %s641_s18, 1  ;;  %p228_p8 = scmp.lt.s32.totalorder %s641_s18, 5 }
  0x19   : > { %p229_p9 = pnand %p514_p7, %p228_p8 }
  0x1a   : > { %s235_s8 = sand.u32 (!%p229_p9), 1, %s617_s12   ;;  %p281_p10 = scmp.lt.s32.totalorder (!%p229_p9), %s629_s15, 1 }
  0x1b   : > { %232 = sbr.rel (%p229_p9) target bundleno = 84 (0x54), region = 62  ;;  %s515_s9 = sshll.u32 (!%p229_p9), %s235_s8, 4 }
  0x1c   : > { %p283_p11 = scmp.lt.s32.totalorder (!%p229_p9), %s625_s14, 1  ;;  %s237_s10 = scalar_lea.vmem (!%p229_p9), [#allocation4], %s515_s9 }
  0x20   : > { %s780_s15 = smov (!%p281_p10, %s629_s15), 1  ;;  %s782_s14 = smov (!%p283_p11, %s625_s14), 1  ;;  %v312_v2 = vld [vmem:[%s237_s10] sm:$0xff]  ;;  %v522_v3 = vld [vmem:[%s237_s10 + $0x8] sm:$0xff]  ;;  %v643_v8 = vmov 1.0  }
  0x21   : > { %s516_s11 = sshll.u32 %s780_s15, 1  ;;  %v318_v4 = vsub.f32 %v312_v2, %v522_v3  ;;  %v319_v5 = vsub.f32 %v522_v3, %v312_v2 }
  0x22   : > { %s286_s21 = sadd.s32 %s516_s11, %s782_s14 }
  0x23   : > { %s517_s22 = sshll.u32 %s286_s21, 3 }
  0x24   : > { %s288_s26 = scalar_lea.vmem %s764_s1, %s517_s22  ;;  %s305_s28 = scalar_lea.vmem %s766_s3, %s517_s22 }
  0x25   : > { %v315_v6 = vld [vmem:[%s288_s26] sm:$0xff]  ;;  %s297_s29 = scalar_lea.vmem %s765_s2, %s517_s22 }
  0x26   : > { %vm316_vm0 = vcmp.ne.s32.totalorder %v315_v6, 255  ;;  %vm317_vm1 = vcmp.eq.s32.totalorder %v315_v6, 1 }
  0x27   : > { %v320_v7 = vsel %vm317_vm1, %v318_v4, %v319_v5  ;;  %v330_v9 = vsel %vm317_vm1, 100.0, %v643_v8 }
  0x28   : > { %v322_v10 = vand.u32 2147483647, %v320_v7  ;;  %v333_v11 = vsel %vm316_vm0, %v330_v9, 0.0  ;;  %v321_v16 = vmax.f32 %v320_v7, 0.0 }
  0x29   : > { %348 = vst [vmem:[%s305_s28] sm:$0xff] %v333_v11 }
  0x2a   : > { %v323_v12 = vsub.f32 0.0, %v322_v10 }
  0x2c   : > { %v324_v13 = vmul.f32 1.442695, %v323_v12 }
  0x2e   : > { %583 = vpow2.f32 %v324_v13 }
  0x3b   : > { %v584_v14 = vpop.eup %583 }
  0x3c   : > { %v326_v15 = vadd.f32 1.0, %v584_v14 }
  0x3e   : > { %585 = vlog2.f32 %v326_v15 }
  0x4b   : > { %v586_v17 = vpop.eup %585 }
  0x4c   : > { %v328_v18 = vmul.f32 0.6931472, %v586_v17 }
  0x4e   : > { %v329_v19 = vadd.f32 %v328_v18, %v321_v16 }
  0x50   : > { %v331_v20 = vmul.f32 %v330_v9, %v329_v19 }
  0x52   : > { %v332_v21 = vsel %vm316_vm0, %v331_v20, 0.0 }
  0x53   : > { %346 = vst [vmem:[%s297_s29] sm:$0xff] %v332_v21 }
  0x54 PF: > { %s14_s18 = sadd.s32 1, %s641_s18   ;;  %s767_s12 = smov %s621_s13 }
  0x55   : > { %p11_p12 = scmp.ge.s32.totalorder %s14_s18, 6   ;;  %s768_s13 = smov %s715_s25 }
  0x56   : > { %s769_s14 = smov %s633_s16  ;;  %s770_s15 = smov %s637_s17 }
  0x57   : > { %s771_s16 = smov %s774_s19  ;;  %s772_s17 = smov %s778_s20 }
  0x58   :  { %13 = sbr.rel (!%p11_p12) target bundleno = 4 (0x4), region = 125 }

</bundles_post_ra>
